<compile_context>
chip_gen: v6e
topology: v6e:2x2x1
jax: 0.10.0
libtpu: 0.0.40
codegen_flags: <defaults>
</compile_context>

<pallas_src>
import jax
import jax.numpy as jnp
from jax.experimental import pallas as pl
from jax.experimental.pallas import tpu as pltpu

D_EMB = 128                       # synthetic emodel embedding width
D_ARC = 128                       # synthetic arcface embedding width
D_POSE = 6                        # angle(3) + trans(3) from the BFM coeffs
N_W = D_EMB + D_ARC + D_POSE      # 262 fused projection width (lane-dense)
COEFF_DIM = 257
ANGLE_SLICE = (224, 227)
TRANS_SLICE = (254, 257)

_EMB_LO, _EMB_HI = 0, D_EMB
_ARC_LO, _ARC_HI = D_EMB, D_EMB + D_ARC
_POSE_LO = D_EMB + D_ARC

_MIB = 1024 * 1024


# --------------------------------------------------------------------------
# Kernel: K-tiled fused projection, bf16 streaming, f32 accumulation.
# --------------------------------------------------------------------------
def _proj_kernel(x_ref, w_ref, out_ref):
    # out block stays resident across the inner ("arbitrary") K axis because
    # its index_map ignores k; it is the accumulator.
    @pl.when(pl.program_id(1) == 0)
    def _init():
        out_ref[...] = jnp.zeros_like(out_ref)

    out_ref[...] += jnp.dot(x_ref[...], w_ref[...],
                            preferred_element_type=jnp.float32)


def _chip_info():
    """(tensorcores per chip, physical VMEM bytes) — host-side, trace-time."""
    kind = ""
    try:
        kind = jax.devices()[0].device_kind.lower()
    except Exception:
        pass
    n_cores = 2 if "v7" in kind else 1                 # v7x: 2 TCs; v5e/v6e: 1
    vmem_phys = 64 * _MIB if "v7" in kind else 128 * _MIB
    try:
        vmem_phys = int(pltpu.get_tpu_info().vmem_capacity_bytes)
    except Exception:
        pass
    return n_cores, vmem_phys


def _choose_tiling(d_in, rows):
    """Pick (n_par K-shards, n_k tiles/shard, tk cols/tile, padded Din, vmem limit)."""
    n_cores, vmem_phys = _chip_info()

    # Scoped VMEM limit: generous but with headroom under the physical
    # ceiling (128 MiB on v5e/v6e, 64 MiB on v7x).
    vmem_limit = int(min(max(vmem_phys - 16 * _MIB, 32 * _MIB), 100 * _MIB))
    tile_budget = int(min(vmem_limit - 4 * _MIB, 64 * _MIB))

    # Double-buffered bf16 bytes per streamed K column (activations + weight).
    per_col = 2 * 2 * (rows + N_W)
    tk_cap = max(128, min(32768, (tile_budget // per_col) // 128 * 128))

    n_par = n_cores                                   # parallel K shards (TCs)
    shard = pl.cdiv(d_in, n_par * 128) * 128          # 128-aligned shard width
    n_k = pl.cdiv(shard, tk_cap)                      # K tiles per shard
    tk = pl.cdiv(shard, n_k * 128) * 128              # near-equal, 128-aligned
    shard = n_k * tk
    d_pad = n_par * shard                             # zero-padded K extent
    return n_par, n_k, tk, d_pad, vmem_limit


def pack_weights(we, wa, wf):
    """Pack synthetic emodel/arcface/face3d heads into one lane-dense bf16
    (Din, 262) weight: [emodel | arcface | angle | trans]; no zero lanes."""
    w_all = jnp.concatenate(
        [we, wa,
         wf[:, ANGLE_SLICE[0]:ANGLE_SLICE[1]],
         wf[:, TRANS_SLICE[0]:TRANS_SLICE[1]]], axis=1)
    return w_all.astype(jnp.bfloat16)


@jax.jit
def _vasa_loss_impl(giiij, gjjij, gsd, gsmod, w_all,
                    emodel_weight, face3d_weight):
    b = giiij.shape[0]
    d_in = w_all.shape[0]
    rows = 4 * b
    # TODO(synk): if several image pairs / micro-batches are scored at once,
    # stack them into `rows` here — the weight stream is amortized for free.

    n_par, n_k, tk, d_pad, vmem_limit = _choose_tiling(d_in, rows)

    # One stacked bf16 operand; XLA fuses reshape+concat+cast into one pass.
    x = jnp.concatenate(
        [giiij.reshape(b, d_in), gjjij.reshape(b, d_in),
         gsd.reshape(b, d_in), gsmod.reshape(b, d_in)],
        axis=0).astype(jnp.bfloat16)

    if d_pad != d_in:
        # Zero K-padding: padded columns/rows contribute nothing to the dot.
        x = jnp.pad(x, ((0, 0), (0, d_pad - d_in)))
        w_all = jnp.pad(w_all, ((0, d_pad - d_in), (0, 0)))

    cost = pl.CostEstimate(
        flops=2 * rows * d_pad * N_W,
        transcendentals=0,
        bytes_accessed=rows * d_pad * 2 + d_pad * N_W * 2
        + n_par * rows * N_W * 4)

    partial = pl.pallas_call(
        _proj_kernel,
        out_shape=jax.ShapeDtypeStruct((n_par, rows, N_W), jnp.float32),
        grid_spec=pltpu.PrefetchScalarGridSpec(
            num_scalar_prefetch=0,
            grid=(n_par, n_k),
            in_specs=[
                pl.BlockSpec((rows, tk), lambda p, k: (0, p * n_k + k)),
                pl.BlockSpec((tk, N_W), lambda p, k: (p * n_k + k, 0)),
            ],
            out_specs=pl.BlockSpec((None, rows, N_W), lambda p, k: (p, 0, 0)),
        ),
        compiler_params=pltpu.CompilerParams(
            dimension_semantics=("parallel", "arbitrary"),
            vmem_limit_bytes=vmem_limit),
        cost_estimate=cost,
    )(x, w_all)

    # Combine per-core K shards, then the tiny f32 loss epilogue.
    proj = partial[0] if n_par == 1 else jnp.sum(partial, axis=0)   # (4B, 262)

    zi = proj[0:b, _EMB_LO:_EMB_HI]
    zj = proj[b:2 * b, _EMB_LO:_EMB_HI]
    esd = proj[2 * b:3 * b, _ARC_LO:_ARC_HI]
    emod = proj[3 * b:4 * b, _ARC_LO:_ARC_HI]
    pose_s = proj[0:b, _POSE_LO:]
    pose_d = proj[b:2 * b, _POSE_LO:]

    def _cos(a, c):
        num = jnp.sum(a * c, axis=1)
        den = jnp.sqrt(jnp.sum(a * a, axis=1) * jnp.sum(c * c, axis=1))
        return num / jnp.maximum(den, 1e-8)

    # cosine_embedding_loss(zi, zj, +1) = mean(1 - cos); then / B * w.
    cosloss = jnp.mean(1.0 - _cos(zi, zj)) / b * emodel_weight
    # sum_b(||r_s - r_d|| + ||t_s - t_d||) / B * w.
    dpose = pose_s - pose_d
    rot = jnp.sum(jnp.sqrt(jnp.sum(dpose[:, 0:3] ** 2, axis=1))
                  + jnp.sqrt(jnp.sum(dpose[:, 3:6] ** 2, axis=1))) \
        / b * face3d_weight
    # cosine_embedding_loss(esd, emod, -1) = mean(max(0, cos)).
    arcloss = jnp.mean(jnp.maximum(_cos(esd, emod), 0.0))

    total = arcloss + rot + cosloss
    return total, {'arcloss': arcloss, 'rotationloss': rot, 'cosloss': cosloss}


def vasa_loss(giiij, gjjij, gsd, gsmod, we, wa, wf, config):
    w = config['weights']['vasa']
    w_all = pack_weights(we, wa, wf)
    # Loss weights are traced scalars (no recompile per distinct value).
    return _vasa_loss_impl(giiij, gjjij, gsd, gsmod, w_all,
                           jnp.asarray(w['emodel'], jnp.float32),
                           jnp.asarray(w['face3d'], jnp.float32))


def init_params(key, d_in):
    k1, k2, k3 = jax.random.split(key, 3)
    we = jax.random.normal(k1, (d_in, D_EMB), jnp.float32) * 0.02      # emodel
    wa = jax.random.normal(k2, (d_in, D_ARC), jnp.float32) * 0.02      # arcface
    wf = jax.random.normal(k3, (d_in, COEFF_DIM), jnp.float32) * 0.02  # face3d
    return we, wa, wf


def vasa_loss_ref(giiij, gjjij, gsd, gsmod, we, wa, wf, config):
    """Pure-JAX f32 reference replicating the PyTorch forward semantics."""
    b = giiij.shape[0]
    d_in = we.shape[0]
    gi = giiij.reshape(b, d_in).astype(jnp.float32)
    gj = gjjij.reshape(b, d_in).astype(jnp.float32)
    sd = gsd.reshape(b, d_in).astype(jnp.float32)
    smod = gsmod.reshape(b, d_in).astype(jnp.float32)

    zi, zj = gi @ we, gj @ we
    esd, emod = sd @ wa, smod @ wa
    cs, cd = gi @ wf, gj @ wf
    r_s, t_s = cs[:, 224:227], cs[:, 254:257]
    r_d, t_d = cd[:, 224:227], cd[:, 254:257]

    def cos(a, c):
        return jnp.sum(a * c, axis=1) / jnp.maximum(
            jnp.linalg.norm(a, axis=1) * jnp.linalg.norm(c, axis=1), 1e-8)

    w = config['weights']['vasa']
    cosloss = jnp.mean(1.0 - cos(zi, zj)) / b * w['emodel']
    rot = jnp.sum(jnp.linalg.norm(r_s - r_d, axis=1)
                  + jnp.linalg.norm(t_s - t_d, axis=1)) / b * w['face3d']
    arcloss = jnp.mean(jnp.maximum(cos(esd, emod), 0.0))
    return arcloss + rot + cosloss, {'arcloss': arcloss,
                                     'rotationloss': rot,
                                     'cosloss': cosloss}


if __name__ == "__main__":
    config = {'weights': {'vasa': {'gaze': 1.0, 'arcface': 1.0,
                                   'emodel': 2.0, 'face3d': 0.5}}}

    B, C, H, W = 2, 4, 16, 16
    d_in = C * H * W

    key = jax.random.PRNGKey(0)
    kg1, kg2, kg3, kg4, kp = jax.random.split(key, 5)
    giiij = jax.random.normal(kg1, (B, C, H, W), jnp.float32)
    gjjij = jax.random.normal(kg2, (B, C, H, W), jnp.float32)
    gsd = jax.random.normal(kg3, (B, C, H, W), jnp.float32)
    gsmod = jax.random.normal(kg4, (B, C, H, W), jnp.float32)

    we, wa, wf = init_params(kp, d_in)

    total, parts = vasa_loss(giiij, gjjij, gsd, gsmod, we, wa, wf, config)
    total = jax.block_until_ready(total)
    parts = jax.tree_util.tree_map(jax.block_until_ready, parts)

    total_ref, parts_ref = vasa_loss_ref(giiij, gjjij, gsd, gsmod,
                                         we, wa, wf, config)

    # bf16-streamed kernel vs f32 reference.
    assert jnp.allclose(total, total_ref, rtol=2e-2, atol=2e-2), \
        (total, total_ref)
    for name in ('arcloss', 'rotationloss', 'cosloss'):
        assert jnp.allclose(parts[name], parts_ref[name],
                            rtol=2e-2, atol=2e-2), (name, parts[name],
                                                    parts_ref[name])

    print("KERNEL_OK")
</pallas_src>

<mosaic_0001>
module attributes {stable_mosaic.version = 11 : i64} {
  func.func @_proj_kernel(%arg0: i32, %arg1: i32, %arg2: memref<8x1024xbf16, #tpu.memory_space<vmem>>, %arg3: memref<1024x262xbf16, #tpu.memory_space<vmem>>, %arg4: memref<1x8x262xf32, #tpu.memory_space<vmem>>) attributes {dimension_semantics = [#tpu.dimension_semantics<parallel>, #tpu.dimension_semantics<arbitrary>], iteration_bounds = array<i64: 1, 1>, scalar_prefetch = 0 : i64, scratch_operands = 0 : i64, tpu.core_type = #tpu.core_type<tc>, window_params = [{transform_indices = @transform_0, window_bounds = array<i64: 8, 1024>}, {transform_indices = @transform_1, window_bounds = array<i64: 1024, 262>}, {transform_indices = @transform_2, window_bounds = array<i64: 1, 8, 262>}]} {
    %c0_i32 = arith.constant 0 : i32
    %0 = arith.cmpi eq, %arg1, %c0_i32 : i32
    %1 = arith.extui %0 : i1 to i32
    %c0_i32_0 = arith.constant 0 : i32
    %2 = arith.cmpi ne, %1, %c0_i32_0 : i32
    scf.if %2 {
      %cst_10 = arith.constant 0.000000e+00 : f32
      %12 = vector.broadcast %cst_10 : f32 to vector<8x262xf32>
      %c0_11 = arith.constant 0 : index
      %c0_12 = arith.constant 0 : index
      %c0_13 = arith.constant 0 : index
      %13 = vector.load %arg4[%c0_11, %c0_12, %c0_13] : memref<1x8x262xf32, #tpu.memory_space<vmem>>, vector<1x8x262xf32>
      %14 = vector.shape_cast %13 : vector<1x8x262xf32> to vector<8x262xf32>
      %15 = vector.shape_cast %12 : vector<8x262xf32> to vector<1x8x262xf32>
      tpu.vector_store %arg4[%c0_11, %c0_12, %c0_13], %15 {strides = array<i32>} : memref<1x8x262xf32, #tpu.memory_space<vmem>>, vector<1x8x262xf32>,
    } else {
    }
    %c0 = arith.constant 0 : index
    %c0_1 = arith.constant 0 : index
    %c0_2 = arith.constant 0 : index
    %3 = vector.load %arg4[%c0, %c0_1, %c0_2] : memref<1x8x262xf32, #tpu.memory_space<vmem>>, vector<1x8x262xf32>
    %4 = vector.shape_cast %3 : vector<1x8x262xf32> to vector<8x262xf32>
    %c0_3 = arith.constant 0 : index
    %c0_4 = arith.constant 0 : index
    %5 = vector.load %arg2[%c0_3, %c0_4] : memref<8x1024xbf16, #tpu.memory_space<vmem>>, vector<8x1024xbf16>
    %c0_5 = arith.constant 0 : index
    %c0_6 = arith.constant 0 : index
    %6 = vector.load %arg3[%c0_5, %c0_6] : memref<1024x262xbf16, #tpu.memory_space<vmem>>, vector<1024x262xbf16>
    %cst = arith.constant dense<0.000000e+00> : vector<8x262xf32>
    %7 = tpu.matmul %5, %6, %cst {dimension_numbers = #tpu.dot_dimension_numbers<[1], [0], [0], [1], [0, 0, 1, 1], [], []>} : vector<8x1024xbf16>, vector<1024x262xbf16>, vector<8x262xf32> -> vector<8x262xf32>
    %8 = arith.addf %4, %7 : vector<8x262xf32>
    %c0_7 = arith.constant 0 : index
    %c0_8 = arith.constant 0 : index
    %c0_9 = arith.constant 0 : index
    %9 = vector.load %arg4[%c0_7, %c0_8, %c0_9] : memref<1x8x262xf32, #tpu.memory_space<vmem>>, vector<1x8x262xf32>
    %10 = vector.shape_cast %9 : vector<1x8x262xf32> to vector<8x262xf32>
    %11 = vector.shape_cast %8 : vector<8x262xf32> to vector<1x8x262xf32>
    tpu.vector_store %arg4[%c0_7, %c0_8, %c0_9], %11 {strides = array<i32>} : memref<1x8x262xf32, #tpu.memory_space<vmem>>, vector<1x8x262xf32>,
    return
  }
  func.func @transform_0(%arg0: i32, %arg1: i32) -> (i32, i32) {
    %c1_i32 = arith.constant 1 : i32
    %0 = arith.muli %arg0, %c1_i32 : i32
    %1 = arith.addi %0, %arg1 : i32
    %c0_i32 = arith.constant 0 : i32
    %c0_i32_0 = arith.constant 0 : i32
    return %c0_i32, %1 : i32, i32
  }
  func.func @transform_1(%arg0: i32, %arg1: i32) -> (i32, i32) {
    %c1_i32 = arith.constant 1 : i32
    %0 = arith.muli %arg0, %c1_i32 : i32
    %1 = arith.addi %0, %arg1 : i32
    %c0_i32 = arith.constant 0 : i32
    %c0_i32_0 = arith.constant 0 : i32
    return %1, %c0_i32 : i32, i32
  }
  func.func @transform_2(%arg0: i32, %arg1: i32) -> (i32, i32, i32) {
    %c0_i32 = arith.constant 0 : i32
    %c0_i32_0 = arith.constant 0 : i32
    %c0_i32_1 = arith.constant 0 : i32
    return %arg0, %c0_i32, %c0_i32_0 : i32, i32, i32
  }
}

</mosaic_0001>

<bundles_post_ra>
// kernel: _vasa_loss_impl.1
= control target key start
LH: loop header
LB: loop body
LE: loop exit
PB: predicated region body
PF: predicated region fallthrough
CT: control target
= control target key end

     0   :  { %vm65_vm0 = vcmask 48128   ;;  %s2947_s1 = inlined_call_operand.vmem [shape: bf16[1024,262], index: 1, kind: input, shape index: {}]   ;;  %s2948_s0 = inlined_call_operand.vmem [shape: bf16[8,1024], index: 0, kind: input, shape index: {}]   ;;  %s2949_s2 = inlined_call_operand.vmem [shape: f32[1,8,262], index: 2, kind: output, shape index: {}]  }
   0x1   :  { %v2018_v0 = vld [vmem:[%s2947_s1 + $0xac] ss:$12 sps:$4 sm:$0xff]   ;;  %v2022_v2 = vld [vmem:[%s2947_s1 + $0xa8] ss:$12 sps:$4 sm:$0xff]   ;;  %v2028_v6 = vld [vmem:[%s2947_s1 + $0x90] ss:$12 sps:$4 sm:$0xff]  }
   0x2   :  { %v2020_v1 = vld [vmem:[%s2947_s1 + $0x22c] ss:$12 sps:$4 sm:$0xff]   ;;  %1382 = vmatprep.subr.bf16.mxu0 %v2018_v0  ;;  %v2023_v3 = vld [vmem:[%s2947_s1 + $0x228] ss:$12 sps:$4 sm:$0xff]   ;;  %v2029_v7 = vld [vmem:[%s2947_s1 + $0x210] ss:$12 sps:$4 sm:$0xff]  }
   0x3   :  { %1423 = vmatprep.subr.bf16.mxu1 %v2020_v1  ;;  %v2024_v4 = vld [vmem:[%s2947_s1 + $0x94] ss:$12 sps:$4 sm:$0xff]   ;;  %1383 = vmatpush1.bf16.msra.mxu0 %v2022_v2  ;;  %v2030_v8 = vld [vmem:[%s2947_s1 + $0x7c] ss:$12 sps:$4 sm:$0xff]   ;;  %v2034_v10 = vld [vmem:[%s2947_s1 + $0x78] ss:$12 sps:$4 sm:$0xff]  }
   0x4   :  { %1424 = vmatpush1.bf16.msra.mxu1 %v2023_v3  ;;  %v2026_v5 = vld [vmem:[%s2947_s1 + $0x214] ss:$12 sps:$4 sm:$0xff]   ;;  %1384 = vmatprep.subr.bf16.mxu0 %v2024_v4  ;;  %v2032_v9 = vld [vmem:[%s2947_s1 + $0x1fc] ss:$12 sps:$4 sm:$0xff]   ;;  %v2035_v11 = vld [vmem:[%s2947_s1 + $0x1f8] ss:$12 sps:$4 sm:$0xff]  }
   0x5   :  { %1425 = vmatprep.subr.bf16.mxu1 %v2026_v5  ;;  %v2036_v12 = vld [vmem:[%s2947_s1 + $0x64] ss:$12 sps:$4 sm:$0xff]   ;;  %v2040_v14 = vld [vmem:[%s2947_s1 + $0x60] ss:$12 sps:$4 sm:$0xff]   ;;  %v2046_v18 = vld [vmem:[%s2947_s1 + $0x48] ss:$12 sps:$4 sm:$0xff]  }
   0x6   :  { %v2038_v13 = vld [vmem:[%s2947_s1 + $0x1e4] ss:$12 sps:$4 sm:$0xff]   ;;  %v2041_v15 = vld [vmem:[%s2947_s1 + $0x1e0] ss:$12 sps:$4 sm:$0xff]   ;;  %v2047_v19 = vld [vmem:[%s2947_s1 + $0x1c8] ss:$12 sps:$4 sm:$0xff]  }
   0x7   :  { %1385 = vmatpush1.bf16.msra.mxu0 %v2028_v6  ;;  %v2042_v16 = vld [vmem:[%s2947_s1 + $0x4c] ss:$12 sps:$4 sm:$0xff]   ;;  %v2048_v20 = vld [vmem:[%s2947_s1 + $0x34] ss:$12 sps:$4 sm:$0xff]   ;;  %v2052_v22 = vld [vmem:[%s2947_s1 + $0x30] ss:$12 sps:$4 sm:$0xff]  }
   0x8   :  { %1426 = vmatpush1.bf16.msra.mxu1 %v2029_v7  ;;  %1386 = vmatprep.subr.bf16.mxu0 %v2030_v8  ;;  %v2044_v17 = vld [vmem:[%s2947_s1 + $0x1cc] ss:$12 sps:$4 sm:$0xff]   ;;  %v2050_v21 = vld [vmem:[%s2947_s1 + $0x1b4] ss:$12 sps:$4 sm:$0xff]   ;;  %v2053_v23 = vld [vmem:[%s2947_s1 + $0x1b0] ss:$12 sps:$4 sm:$0xff]  }
   0x9   :  { %1427 = vmatprep.subr.bf16.mxu1 %v2032_v9  ;;  %v2054_v24 = vld [vmem:[%s2947_s1 + $0x1c] ss:$12 sps:$4 sm:$0xff]   ;;  %v2058_v26 = vld [vmem:[%s2947_s1 + $0x18] ss:$12 sps:$4 sm:$0xff]   ;;  %v2064_v30 = vld [vmem:[%s2947_s1] ss:$12 sps:$4 sm:$0xff]  }
   0xa   :  { %v2056_v25 = vld [vmem:[%s2947_s1 + $0x19c] ss:$12 sps:$4 sm:$0xff]   ;;  %v2059_v27 = vld [vmem:[%s2947_s1 + $0x198] ss:$12 sps:$4 sm:$0xff]   ;;  %v2065_v31 = vld [vmem:[%s2947_s1 + $0x180] ss:$12 sps:$4 sm:$0xff]  }
   0xb   :  { %1387 = vmatpush1.bf16.msra.mxu0 %v2034_v10  ;;  %v2060_v28 = vld [vmem:[%s2947_s1 + $0x4] ss:$12 sps:$4 sm:$0xff]   ;;  %v2066_v32 = vld [vmem:[%s2947_s1 + $0x16c] ss:$12 sps:$4 sm:$0xff]   ;;  %v2070_v34 = vld [vmem:[%s2947_s1 + $0x168] ss:$12 sps:$4 sm:$0xff]  }
   0xc   :  { %1428 = vmatpush1.bf16.msra.mxu1 %v2035_v11  ;;  %1388 = vmatprep.subr.bf16.mxu0 %v2036_v12  ;;  %v2062_v29 = vld [vmem:[%s2947_s1 + $0x184] ss:$12 sps:$4 sm:$0xff]   ;;  %v2068_v33 = vld [vmem:[%s2947_s1 + $0x2ec] ss:$12 sps:$4 sm:$0xff]   ;;  %v2071_v35 = vld [vmem:[%s2947_s1 + $0x2e8] ss:$12 sps:$4 sm:$0xff]  }
   0xd   :  { %1429 = vmatprep.subr.bf16.mxu1 %v2038_v13  ;;  %v2072_v36 = vld [vmem:[%s2947_s1 + $0x154] ss:$12 sps:$4 sm:$0xff]   ;;  %v2076_v38 = vld [vmem:[%s2947_s1 + $0x150] ss:$12 sps:$4 sm:$0xff]   ;;  %v2082_v42 = vld [vmem:[%s2947_s1 + $0x138] ss:$12 sps:$4 sm:$0xff]  }
   0xe   :  { %v2074_v37 = vld [vmem:[%s2947_s1 + $0x2d4] ss:$12 sps:$4 sm:$0xff]   ;;  %v2077_v39 = vld [vmem:[%s2947_s1 + $0x2d0] ss:$12 sps:$4 sm:$0xff]   ;;  %v2083_v43 = vld [vmem:[%s2947_s1 + $0x2b8] ss:$12 sps:$4 sm:$0xff]  }
   0xf   :  { %1389 = vmatpush1.bf16.msra.mxu0 %v2040_v14  ;;  %v2078_v40 = vld [vmem:[%s2947_s1 + $0x13c] ss:$12 sps:$4 sm:$0xff]   ;;  %v2084_v44 = vld [vmem:[%s2947_s1 + $0x124] ss:$12 sps:$4 sm:$0xff]   ;;  %v2088_v49 = vld [vmem:[%s2947_s1 + $0x120] ss:$12 sps:$4 sm:$0xff]  }
  0x10   :  { %1430 = vmatpush1.bf16.msra.mxu1 %v2041_v15  ;;  %1390 = vmatprep.subr.bf16.mxu0 %v2042_v16  ;;  %v2080_v41 = vld [vmem:[%s2947_s1 + $0x2bc] ss:$12 sps:$4 sm:$0xff]   ;;  %v2086_v45 = vld [vmem:[%s2947_s1 + $0x2a4] ss:$12 sps:$4 sm:$0xff]   ;;  %v2089_v50 = vld [vmem:[%s2947_s1 + $0x2a0] ss:$12 sps:$4 sm:$0xff]  }
  0x11   :  { %1431 = vmatprep.subr.bf16.mxu1 %v2044_v17  ;;  %v70_v46 = vld [vmem:[%s2948_s0] sm:$0xff]  ;;  %v71_v48 = vld [vmem:[%s2948_s0 + $0x8] sm:$0xff]  ;;  %v2100_v58 = vld [vmem:[%s2947_s1 + $0xf0] ss:$12 sps:$4 sm:$0xff]  }
  0x12   :  { %v2439_v47 = vcombine.high %v70_v46, %v70_v46  ;;  %v2450_v51 = vcombine.high %v71_v48, %v71_v48  ;;  %v2090_v52 = vld [vmem:[%s2947_s1 + $0x10c] ss:$12 sps:$4 sm:$0xff]   ;;  %v2094_v54 = vld [vmem:[%s2947_s1 + $0x108] ss:$12 sps:$4 sm:$0xff]   ;;  %v2101_v59 = vld [vmem:[%s2947_s1 + $0x270] ss:$12 sps:$4 sm:$0xff]   ;;  %v2508_v6 = vcombine.low %v70_v46, %v70_v46  ;;  %v2510_v7 = vcombine.low %v71_v48, %v71_v48 }
  0x13   :  { %1391 = vmatpush1.bf16.msra.mxu0 %v2046_v18  ;;  %v2092_v53 = vld [vmem:[%s2947_s1 + $0x28c] ss:$12 sps:$4 sm:$0xff]   ;;  %v2095_v55 = vld [vmem:[%s2947_s1 + $0x288] ss:$12 sps:$4 sm:$0xff]   ;;  %v2108_v0 = vld [vmem:[%s2947_s1 + $0xc4] ss:$12 sps:$4 sm:$0xff]  }
  0x14   :  { %1432 = vmatpush1.bf16.msra.mxu1 %v2047_v19  ;;  %1392 = vmatprep.subr.bf16.mxu0 %v2048_v20  ;;  %v2096_v56 = vld [vmem:[%s2947_s1 + $0xf4] ss:$12 sps:$4 sm:$0xff]   ;;  %v2102_v60 = vld [vmem:[%s2947_s1 + $0xdc] ss:$12 sps:$4 sm:$0xff]   ;;  %v2106_v62 = vld [vmem:[%s2947_s1 + $0xd8] ss:$12 sps:$4 sm:$0xff]  }
  0x15   :  { %1433 = vmatprep.subr.bf16.mxu1 %v2050_v21  ;;  %1414 = vmatprep.mubr.bf16.mxu0 %v2439_v47  ;;  %v2098_v57 = vld [vmem:[%s2947_s1 + $0x274] ss:$12 sps:$4 sm:$0xff]   ;;  %v2104_v61 = vld [vmem:[%s2947_s1 + $0x25c] ss:$12 sps:$4 sm:$0xff]   ;;  %v2107_v63 = vld [vmem:[%s2947_s1 + $0x258] ss:$12 sps:$4 sm:$0xff]  }
  0x16   :  { %1455 = vmatprep.mubr.bf16.mxu1 %v2450_v51  ;;  %v2110_v1 = vld [vmem:[%s2947_s1 + $0x244] ss:$12 sps:$4 sm:$0xff]   ;;  %v2112_v2 = vld [vmem:[%s2947_s1 + $0xc0] ss:$12 sps:$4 sm:$0xff]   ;;  %v2118_v8 = vld [vmem:[%s2947_s1 + $0x3a8] ss:$12 sps:$4 sm:$0xff]  }
  0x17   :  { %1393 = vmatpush1.bf16.msra.mxu0 %v2052_v22  ;;  %v2113_v3 = vld [vmem:[%s2947_s1 + $0x240] ss:$12 sps:$4 sm:$0xff]   ;;  %v2121_v9 = vld [vmem:[%s2947_s1 + $0x528] ss:$12 sps:$4 sm:$0xff]   ;;  %v2124_v12 = vld [vmem:[%s2947_s1 + $0x390] ss:$12 sps:$4 sm:$0xff]  }
  0x18   :  { %1434 = vmatpush1.bf16.msra.mxu1 %v2053_v23  ;;  %1394 = vmatprep.subr.bf16.mxu0 %v2054_v24  ;;  %v2120_v4 = vld [vmem:[%s2947_s1 + $0x3ac] ss:$12 sps:$4 sm:$0xff]   ;;  %v2126_v10 = vld [vmem:[%s2947_s1 + $0x394] ss:$12 sps:$4 sm:$0xff]   ;;  %v2127_v13 = vld [vmem:[%s2947_s1 + $0x510] ss:$12 sps:$4 sm:$0xff]  }
  0x19   :  { %1435 = vmatprep.subr.bf16.mxu1 %v2056_v25  ;;  %v2123_v5 = vld [vmem:[%s2947_s1 + $0x52c] ss:$12 sps:$4 sm:$0xff]   ;;  %v2129_v11 = vld [vmem:[%s2947_s1 + $0x514] ss:$12 sps:$4 sm:$0xff]   ;;  %v2132_v14 = vld [vmem:[%s2947_s1 + $0x37c] ss:$12 sps:$4 sm:$0xff]  }
  0x1a   :  { %v2135_v15 = vld [vmem:[%s2947_s1 + $0x4fc] ss:$12 sps:$4 sm:$0xff]   ;;  %v2130_v16 = vld [vmem:[%s2947_s1 + $0x378] ss:$12 sps:$4 sm:$0xff]   ;;  %v2136_v20 = vld [vmem:[%s2947_s1 + $0x360] ss:$12 sps:$4 sm:$0xff]  }
  0x1b   :  { %1395 = vmatpush1.bf16.msra.mxu0 %v2058_v26  ;;  %v2133_v17 = vld [vmem:[%s2947_s1 + $0x4f8] ss:$12 sps:$4 sm:$0xff]   ;;  %v2139_v21 = vld [vmem:[%s2947_s1 + $0x4e0] ss:$12 sps:$4 sm:$0xff]   ;;  %v2142_v24 = vld [vmem:[%s2947_s1 + $0x348] ss:$12 sps:$4 sm:$0xff]  }
  0x1c   :  { %1436 = vmatpush1.bf16.msra.mxu1 %v2059_v27  ;;  %1396 = vmatprep.subr.bf16.mxu0 %v2060_v28  ;;  %v2138_v18 = vld [vmem:[%s2947_s1 + $0x364] ss:$12 sps:$4 sm:$0xff]   ;;  %v2144_v22 = vld [vmem:[%s2947_s1 + $0x34c] ss:$12 sps:$4 sm:$0xff]   ;;  %v2145_v25 = vld [vmem:[%s2947_s1 + $0x4c8] ss:$12 sps:$4 sm:$0xff]  }
  0x1d   :  { %1437 = vmatprep.subr.bf16.mxu1 %v2062_v29  ;;  %v2141_v19 = vld [vmem:[%s2947_s1 + $0x4e4] ss:$12 sps:$4 sm:$0xff]   ;;  %v2147_v23 = vld [vmem:[%s2947_s1 + $0x4cc] ss:$12 sps:$4 sm:$0xff]   ;;  %v2150_v26 = vld [vmem:[%s2947_s1 + $0x334] ss:$12 sps:$4 sm:$0xff]  }
  0x1e   :  { %v2153_v27 = vld [vmem:[%s2947_s1 + $0x4b4] ss:$12 sps:$4 sm:$0xff]   ;;  %v2148_v28 = vld [vmem:[%s2947_s1 + $0x330] ss:$12 sps:$4 sm:$0xff]  }
  0x1f   :  { %1397 = vmatpush1.bf16.msra.mxu0 %v2064_v30  ;;  %v2151_v29 = vld [vmem:[%s2947_s1 + $0x4b0] ss:$12 sps:$4 sm:$0xff]   ;;  %v2174_v46 = vld [vmem:[%s2947_s1 + $0x454] ss:$12 sps:$4 sm:$0xff]  }
  0x20   :  { %1438 = vmatpush1.bf16.msra.mxu1 %v2065_v31  ;;  %1398 = vmatprep.subr.bf16.mxu0 %v2066_v32  ;;  %v2156_v30 = vld [vmem:[%s2947_s1 + $0x31c] ss:$12 sps:$4 sm:$0xff]   ;;  %v2154_v32 = vld [vmem:[%s2947_s1 + $0x318] ss:$12 sps:$4 sm:$0xff]   ;;  %v2177_v48 = vld [vmem:[%s2947_s1 + $0x5d4] ss:$12 sps:$4 sm:$0xff]  }
  0x21   :  { %1439 = vmatprep.subr.bf16.mxu1 %v2068_v33  ;;  %v2159_v31 = vld [vmem:[%s2947_s1 + $0x49c] ss:$12 sps:$4 sm:$0xff]   ;;  %v2592_v33 = vld [vmem:[%s2948_s0 + $0x10] sm:$0xff] }
  0x23   :  { %1399 = vmatpush2.bf16.msra.mxu0 %v2070_v34  ;;  %v2597_v34 = vld [vmem:[%s2948_s0 + $0x18] sm:$0xff] }
  0x24   :  { %1440 = vmatpush2.bf16.msra.mxu1 %v2071_v35  ;;  %1400 = vmatprep.subr.bf16.mxu0 %v2072_v36  ;;  %v2157_v35 = vld [vmem:[%s2947_s1 + $0x498] ss:$12 sps:$4 sm:$0xff]   ;;  %v2604_v36 = vcombine.high %v2592_v33, %v2592_v33 }
  0x25   :  { %1441 = vmatprep.subr.bf16.mxu1 %v2074_v37  ;;  %v2608_v37 = vcombine.high %v2597_v34, %v2597_v34 }
  0x27   :  { %1401 = vmatpush2.bf16.msra.mxu0 %v2076_v38  ;;  %v2162_v38 = vld [vmem:[%s2947_s1 + $0x304] ss:$12 sps:$4 sm:$0xff]  }
  0x28   :  { %1442 = vmatpush2.bf16.msra.mxu1 %v2077_v39  ;;  %1402 = vmatprep.subr.bf16.mxu0 %v2078_v40  ;;  %v2165_v39 = vld [vmem:[%s2947_s1 + $0x484] ss:$12 sps:$4 sm:$0xff]   ;;  %v2160_v40 = vld [vmem:[%s2947_s1 + $0x300] ss:$12 sps:$4 sm:$0xff]  }
  0x29   :  { %1443 = vmatprep.subr.bf16.mxu1 %v2080_v41  ;;  %v2163_v41 = vld [vmem:[%s2947_s1 + $0x480] ss:$12 sps:$4 sm:$0xff]  }
  0x2b   :  { %1403 = vmatpush2.bf16.msra.mxu0 %v2082_v42  ;;  %v2168_v42 = vld [vmem:[%s2947_s1 + $0x46c] ss:$12 sps:$4 sm:$0xff]  }
  0x2c   :  { %1444 = vmatpush2.bf16.msra.mxu1 %v2083_v43  ;;  %1404 = vmatprep.subr.bf16.mxu0 %v2084_v44  ;;  %v2171_v43 = vld [vmem:[%s2947_s1 + $0x5ec] ss:$12 sps:$4 sm:$0xff]   ;;  %v2166_v44 = vld [vmem:[%s2947_s1 + $0x468] ss:$12 sps:$4 sm:$0xff]  }
  0x2d   :  { %1445 = vmatprep.subr.bf16.mxu1 %v2086_v45  ;;  %v2169_v45 = vld [vmem:[%s2947_s1 + $0x5e8] ss:$12 sps:$4 sm:$0xff]  }
  0x2f   :  { %1405 = vmatpush2.bf16.msra.mxu0 %v2088_v49  ;;  %v2172_v49 = vld [vmem:[%s2947_s1 + $0x450] ss:$12 sps:$4 sm:$0xff]  }
  0x30   :  { %1446 = vmatpush2.bf16.msra.mxu1 %v2089_v50  ;;  %1406 = vmatprep.subr.bf16.mxu0 %v2090_v52  ;;  %v2175_v50 = vld [vmem:[%s2947_s1 + $0x5d0] ss:$12 sps:$4 sm:$0xff]  }
  0x31   :  { %1447 = vmatprep.subr.bf16.mxu1 %v2092_v53  ;;  %v2180_v52 = vld [vmem:[%s2947_s1 + $0x43c] ss:$12 sps:$4 sm:$0xff]  }
  0x32   :  { %v2183_v53 = vld [vmem:[%s2947_s1 + $0x5bc] ss:$12 sps:$4 sm:$0xff]  }
  0x33   :  { %1407 = vmatpush2.bf16.msra.mxu0 %v2094_v54  ;;  %v2178_v54 = vld [vmem:[%s2947_s1 + $0x438] ss:$12 sps:$4 sm:$0xff]  }
  0x34   :  { %1448 = vmatpush2.bf16.msra.mxu1 %v2095_v55  ;;  %1408 = vmatprep.subr.bf16.mxu0 %v2096_v56  ;;  %v2181_v55 = vld [vmem:[%s2947_s1 + $0x5b8] ss:$12 sps:$4 sm:$0xff]  }
  0x35   :  { %1449 = vmatprep.subr.bf16.mxu1 %v2098_v57  ;;  %v2186_v56 = vld [vmem:[%s2947_s1 + $0x424] ss:$12 sps:$4 sm:$0xff]  }
  0x36   :  { %v2189_v57 = vld [vmem:[%s2947_s1 + $0x5a4] ss:$12 sps:$4 sm:$0xff]  }
  0x37   :  { %1409 = vmatpush2.bf16.msra.mxu0 %v2100_v58  ;;  %v2184_v58 = vld [vmem:[%s2947_s1 + $0x420] ss:$12 sps:$4 sm:$0xff]  }
  0x38   :  { %1450 = vmatpush2.bf16.msra.mxu1 %v2101_v59  ;;  %1410 = vmatprep.subr.bf16.mxu0 %v2102_v60  ;;  %v2187_v59 = vld [vmem:[%s2947_s1 + $0x5a0] ss:$12 sps:$4 sm:$0xff]  }
  0x39   :  { %1451 = vmatprep.subr.bf16.mxu1 %v2104_v61  ;;  %v2192_v60 = vld [vmem:[%s2947_s1 + $0x40c] ss:$12 sps:$4 sm:$0xff]  }
  0x3a   :  { %v2195_v61 = vld [vmem:[%s2947_s1 + $0x58c] ss:$12 sps:$4 sm:$0xff]  }
  0x3b   :  { %1411 = vmatpush2.bf16.msra.mxu0 %v2106_v62  ;;  %v2190_v62 = vld [vmem:[%s2947_s1 + $0x408] ss:$12 sps:$4 sm:$0xff]  }
  0x3c   :  { %1452 = vmatpush2.bf16.msra.mxu1 %v2107_v63  ;;  %1412 = vmatprep.subr.bf16.mxu0 %v2108_v0  ;;  %v2193_v63 = vld [vmem:[%s2947_s1 + $0x588] ss:$12 sps:$4 sm:$0xff]  }
  0x3d   :  { %1453 = vmatprep.subr.bf16.mxu1 %v2110_v1  ;;  %v2198_v0 = vld [vmem:[%s2947_s1 + $0x3f4] ss:$12 sps:$4 sm:$0xff]  }
  0x3e   :  { %v2201_v1 = vld [vmem:[%s2947_s1 + $0x574] ss:$12 sps:$4 sm:$0xff]  }
  0x3f   :  { %1413 = vmatpush2.bf16.msra.mxu0 %v2112_v2  ;;  %v2196_v2 = vld [vmem:[%s2947_s1 + $0x3f0] ss:$12 sps:$4 sm:$0xff]  }
  0x40   :  { %1454 = vmatpush2.bf16.msra.mxu1 %v2113_v3  ;;  %1464 = vmatprep.subr.bf16.mxu0 %v2120_v4  ;;  %v2199_v3 = vld [vmem:[%s2947_s1 + $0x570] ss:$12 sps:$4 sm:$0xff]  }
  0x41   :  { %1505 = vmatprep.subr.bf16.mxu1 %v2123_v5  ;;  %v2204_v4 = vld [vmem:[%s2947_s1 + $0x3dc] ss:$12 sps:$4 sm:$0xff]  }
  0x42   :  { %1415 = vmatmul.mubr.bf16.vlgmr.msra.gmra.mxu0 %v2508_v6  ;;  %v2207_v5 = vld [vmem:[%s2947_s1 + $0x55c] ss:$12 sps:$4 sm:$0xff]  }
  0x43   :  { %1456 = vmatmul.mubr.bf16.vlgmr.msra.gmra.mxu1 %v2510_v7  ;;  %1465 = vmatpush1.bf16.msra.mxu0 %v2118_v8  ;;  %v2202_v8 = vld [vmem:[%s2947_s1 + $0x3d8] ss:$12 sps:$4 sm:$0xff]  }
  0x44   :  { %1506 = vmatpush1.bf16.msra.mxu1 %v2121_v9  ;;  %1466 = vmatprep.subr.bf16.mxu0 %v2126_v10  ;;  %v2205_v9 = vld [vmem:[%s2947_s1 + $0x558] ss:$12 sps:$4 sm:$0xff]  }
  0x45   :  { %1507 = vmatprep.subr.bf16.mxu1 %v2129_v11  ;;  %1496 = vmatprep.mubr.bf16.mxu0 %v2604_v36  ;;  %v2210_v10 = vld [vmem:[%s2947_s1 + $0x3c4] ss:$12 sps:$4 sm:$0xff]  }
  0x46   :  { %1537 = vmatprep.mubr.bf16.mxu1 %v2608_v37  ;;  %v2213_v11 = vld [vmem:[%s2947_s1 + $0x544] ss:$12 sps:$4 sm:$0xff]  }
  0x47   :  { %1467 = vmatpush1.bf16.msra.mxu0 %v2124_v12  ;;  %v2208_v12 = vld [vmem:[%s2947_s1 + $0x3c0] ss:$12 sps:$4 sm:$0xff]  }
  0x48   :  { %1508 = vmatpush1.bf16.msra.mxu1 %v2127_v13  ;;  %1468 = vmatprep.subr.bf16.mxu0 %v2132_v14  ;;  %v2211_v13 = vld [vmem:[%s2947_s1 + $0x540] ss:$12 sps:$4 sm:$0xff]   ;;  %v2218_v14 = vld [vmem:[%s2947_s1 + $0x170] ss:$12 sps:$4 sm:$0xff]  }
  0x49   :  { %1509 = vmatprep.subr.bf16.mxu1 %v2135_v15  ;;  %v2219_v15 = vld [vmem:[%s2947_s1 + $0x2f0] ss:$12 sps:$4 sm:$0xff]  }
  0x4b   :  { %1469 = vmatpush1.bf16.msra.mxu0 %v2130_v16  ;;  %v2220_v16 = vld [vmem:[%s2947_s1 + $0xb0] ss:$12 sps:$4 sm:$0xff]  }
  0x4c   :  { %1510 = vmatpush1.bf16.msra.mxu1 %v2133_v17  ;;  %1470 = vmatprep.subr.bf16.mxu0 %v2138_v18  ;;  %v2731_v17 = vcombine.low %v2592_v33, %v2592_v33  ;;  %v2735_v18 = vcombine.low %v2597_v34, %v2597_v34  ;;  %v2237_v33 = vld [vmem:[%s2947_s1 + $0x1d0] ss:$12 sps:$4 sm:$0xff]   ;;  %v2238_v34 = vld [vmem:[%s2947_s1 + $0xf8] ss:$12 sps:$4 sm:$0xff]  }
  0x4d   :  { %1511 = vmatprep.subr.bf16.mxu1 %v2141_v19  ;;  %v2221_v19 = vld [vmem:[%s2947_s1 + $0x230] ss:$12 sps:$4 sm:$0xff]  }
  0x4f   :  { %1471 = vmatpush1.bf16.msra.mxu0 %v2136_v20  ;;  %v2222_v20 = vld [vmem:[%s2947_s1 + $0x158] ss:$12 sps:$4 sm:$0xff]  }
  0x50   :  { %1512 = vmatpush1.bf16.msra.mxu1 %v2139_v21  ;;  %1472 = vmatprep.subr.bf16.mxu0 %v2144_v22  ;;  %v2223_v21 = vld [vmem:[%s2947_s1 + $0x2d8] ss:$12 sps:$4 sm:$0xff]  }
  0x51   :  { %1513 = vmatprep.subr.bf16.mxu1 %v2147_v23  ;;  %v2224_v22 = vld [vmem:[%s2947_s1 + $0x98] ss:$12 sps:$4 sm:$0xff]  }
  0x52   :  { %v2225_v23 = vld [vmem:[%s2947_s1 + $0x218] ss:$12 sps:$4 sm:$0xff]  }
  0x53   :  { %1473 = vmatpush1.bf16.msra.mxu0 %v2142_v24  ;;  %v2226_v24 = vld [vmem:[%s2947_s1 + $0x140] ss:$12 sps:$4 sm:$0xff]  }
  0x54   :  { %1514 = vmatpush1.bf16.msra.mxu1 %v2145_v25  ;;  %1474 = vmatprep.subr.bf16.mxu0 %v2150_v26  ;;  %v2227_v25 = vld [vmem:[%s2947_s1 + $0x2c0] ss:$12 sps:$4 sm:$0xff]  }
  0x55   :  { %1515 = vmatprep.subr.bf16.mxu1 %v2153_v27  ;;  %v2228_v26 = vld [vmem:[%s2947_s1 + $0x80] ss:$12 sps:$4 sm:$0xff]  }
  0x56   :  { %v2229_v27 = vld [vmem:[%s2947_s1 + $0x200] ss:$12 sps:$4 sm:$0xff]  }
  0x57   :  { %1475 = vmatpush1.bf16.msra.mxu0 %v2148_v28  ;;  %v2230_v28 = vld [vmem:[%s2947_s1 + $0x128] ss:$12 sps:$4 sm:$0xff]  }
  0x58   :  { %1516 = vmatpush1.bf16.msra.mxu1 %v2151_v29  ;;  %1476 = vmatprep.subr.bf16.mxu0 %v2156_v30  ;;  %v2231_v29 = vld [vmem:[%s2947_s1 + $0x2a8] ss:$12 sps:$4 sm:$0xff]   ;;  %v2234_v30 = vld [vmem:[%s2947_s1 + $0x110] ss:$12 sps:$4 sm:$0xff]  }
  0x59   :  { %1517 = vmatprep.subr.bf16.mxu1 %v2159_v31  ;;  %v2235_v31 = vld [vmem:[%s2947_s1 + $0x290] ss:$12 sps:$4 sm:$0xff]  }
  0x5b   :  { %1477 = vmatpush1.bf16.msra.mxu0 %v2154_v32  ;;  %v2236_v32 = vld [vmem:[%s2947_s1 + $0x50] ss:$12 sps:$4 sm:$0xff]  }
  0x5c   :  { %1518 = vmatpush1.bf16.msra.mxu1 %v2157_v35  ;;  %1478 = vmatprep.subr.bf16.mxu0 %v2162_v38  ;;  %v2239_v35 = vld [vmem:[%s2947_s1 + $0x278] ss:$12 sps:$4 sm:$0xff]  }
  0x5d   :  { %1519 = vmatprep.subr.bf16.mxu1 %v2165_v39  ;;  %v2240_v38 = vld [vmem:[%s2947_s1 + $0x38] ss:$12 sps:$4 sm:$0xff]  }
  0x5e   :  { %v2241_v39 = vld [vmem:[%s2947_s1 + $0x1b8] ss:$12 sps:$4 sm:$0xff]  }
  0x5f   :  { %1479 = vmatpush1.bf16.msra.mxu0 %v2160_v40  ;;  %v2242_v40 = vld [vmem:[%s2947_s1 + $0xe0] ss:$12 sps:$4 sm:$0xff]  }
  0x60   :  { %1520 = vmatpush1.bf16.msra.mxu1 %v2163_v41  ;;  %1480 = vmatprep.subr.bf16.mxu0 %v2168_v42  ;;  %v2243_v41 = vld [vmem:[%s2947_s1 + $0x260] ss:$12 sps:$4 sm:$0xff]  }
  0x61   :  { %1521 = vmatprep.subr.bf16.mxu1 %v2171_v43  ;;  %v2244_v42 = vld [vmem:[%s2947_s1 + $0x20] ss:$12 sps:$4 sm:$0xff]  }
  0x62   :  { %v2245_v43 = vld [vmem:[%s2947_s1 + $0x1a0] ss:$12 sps:$4 sm:$0xff]  }
  0x63   :  { %1481 = vmatpush2.bf16.msra.mxu0 %v2166_v44  ;;  %v2246_v44 = vld [vmem:[%s2947_s1 + $0xc8] ss:$12 sps:$4 sm:$0xff]  }
  0x64   :  { %1522 = vmatpush2.bf16.msra.mxu1 %v2169_v45  ;;  %1482 = vmatprep.subr.bf16.mxu0 %v2174_v46  ;;  %v2247_v45 = vld [vmem:[%s2947_s1 + $0x248] ss:$12 sps:$4 sm:$0xff]  }
  0x65   :  { %1523 = vmatprep.subr.bf16.mxu1 %v2177_v48  ;;  %v2248_v46 = vld [vmem:[%s2947_s1 + $0x8] ss:$12 sps:$4 sm:$0xff]  }
  0x66   :  { %v2249_v48 = vld [vmem:[%s2947_s1 + $0x188] ss:$12 sps:$4 sm:$0xff]  }
  0x67   :  { %1483 = vmatpush2.bf16.msra.mxu0 %v2172_v49  ;;  %v2250_v49 = vld [vmem:[%s2947_s1 + $0x470] ss:$12 sps:$4 sm:$0xff]  }
  0x68   :  { %1524 = vmatpush2.bf16.msra.mxu1 %v2175_v50  ;;  %1484 = vmatprep.subr.bf16.mxu0 %v2180_v52  ;;  %v2251_v50 = vld [vmem:[%s2947_s1 + $0x5f0] ss:$12 sps:$4 sm:$0xff]  }
  0x69   :  { %1525 = vmatprep.subr.bf16.mxu1 %v2183_v53  ;;  %v2252_v52 = vld [vmem:[%s2947_s1 + $0x3b0] ss:$12 sps:$4 sm:$0xff]  }
  0x6a   :  { %v2253_v53 = vld [vmem:[%s2947_s1 + $0x530] ss:$12 sps:$4 sm:$0xff]  }
  0x6b   :  { %1485 = vmatpush2.bf16.msra.mxu0 %v2178_v54  ;;  %v2254_v54 = vld [vmem:[%s2947_s1 + $0x458] ss:$12 sps:$4 sm:$0xff]  }
  0x6c   :  { %1526 = vmatpush2.bf16.msra.mxu1 %v2181_v55  ;;  %1486 = vmatprep.subr.bf16.mxu0 %v2186_v56  ;;  %v2255_v55 = vld [vmem:[%s2947_s1 + $0x5d8] ss:$12 sps:$4 sm:$0xff]  }
  0x6d   :  { %1527 = vmatprep.subr.bf16.mxu1 %v2189_v57  ;;  %v2256_v56 = vld [vmem:[%s2947_s1 + $0x398] ss:$12 sps:$4 sm:$0xff]  }
  0x6e   :  { %v2257_v57 = vld [vmem:[%s2947_s1 + $0x518] ss:$12 sps:$4 sm:$0xff]  }
  0x6f   :  { %1487 = vmatpush2.bf16.msra.mxu0 %v2184_v58  ;;  %v2258_v58 = vld [vmem:[%s2947_s1 + $0x440] ss:$12 sps:$4 sm:$0xff]  }
  0x70   :  { %1528 = vmatpush2.bf16.msra.mxu1 %v2187_v59  ;;  %1488 = vmatprep.subr.bf16.mxu0 %v2192_v60  ;;  %v2261_v59 = vld [vmem:[%s2947_s1 + $0x500] ss:$12 sps:$4 sm:$0xff]   ;;  %v2262_v60 = vld [vmem:[%s2947_s1 + $0x428] ss:$12 sps:$4 sm:$0xff]  }
  0x71   :  { %1529 = vmatprep.subr.bf16.mxu1 %v2195_v61  ;;  %v2265_v61 = vld [vmem:[%s2947_s1 + $0x4e8] ss:$12 sps:$4 sm:$0xff]  }
  0x73   :  { %1489 = vmatpush2.bf16.msra.mxu0 %v2190_v62  ;;  %v2266_v62 = vld [vmem:[%s2947_s1 + $0x410] ss:$12 sps:$4 sm:$0xff]  }
  0x74   :  { %1530 = vmatpush2.bf16.msra.mxu1 %v2193_v63  ;;  %1490 = vmatprep.subr.bf16.mxu0 %v2198_v0  ;;  %v2267_v63 = vld [vmem:[%s2947_s1 + $0x590] ss:$12 sps:$4 sm:$0xff]  }
  0x75   :  { %1531 = vmatprep.subr.bf16.mxu1 %v2201_v1  ;;  %v2268_v0 = vld [vmem:[%s2947_s1 + $0x350] ss:$12 sps:$4 sm:$0xff]  }
  0x76   :  { %v2269_v1 = vld [vmem:[%s2947_s1 + $0x4d0] ss:$12 sps:$4 sm:$0xff]  }
  0x77   :  { %1491 = vmatpush2.bf16.msra.mxu0 %v2196_v2  ;;  %v2270_v2 = vld [vmem:[%s2947_s1 + $0x3f8] ss:$12 sps:$4 sm:$0xff]  }
  0x78   :  { %1532 = vmatpush2.bf16.msra.mxu1 %v2199_v3  ;;  %1492 = vmatprep.subr.bf16.mxu0 %v2204_v4  ;;  %v2271_v3 = vld [vmem:[%s2947_s1 + $0x578] ss:$12 sps:$4 sm:$0xff]  }
  0x79   :  { %1533 = vmatprep.subr.bf16.mxu1 %v2207_v5  ;;  %v2272_v4 = vld [vmem:[%s2947_s1 + $0x338] ss:$12 sps:$4 sm:$0xff]  }
  0x7a   :  { %v2273_v5 = vld [vmem:[%s2947_s1 + $0x4b8] ss:$12 sps:$4 sm:$0xff]  }
  0x7b   :  { %1493 = vmatpush2.bf16.msra.mxu0 %v2202_v8  ;;  %v2274_v8 = vld [vmem:[%s2947_s1 + $0x3e0] ss:$12 sps:$4 sm:$0xff]  }
  0x7c   :  { %1534 = vmatpush2.bf16.msra.mxu1 %v2205_v9  ;;  %1494 = vmatprep.subr.bf16.mxu0 %v2210_v10  ;;  %v2275_v9 = vld [vmem:[%s2947_s1 + $0x560] ss:$12 sps:$4 sm:$0xff]  }
  0x7d   :  { %1535 = vmatprep.subr.bf16.mxu1 %v2213_v11  ;;  %v2276_v10 = vld [vmem:[%s2947_s1 + $0x320] ss:$12 sps:$4 sm:$0xff]  }
  0x7e   :  { %v2277_v11 = vld [vmem:[%s2947_s1 + $0x4a0] ss:$12 sps:$4 sm:$0xff]  }
  0x7f   :  { %1495 = vmatpush2.bf16.msra.mxu0 %v2208_v12  ;;  %v2278_v12 = vld [vmem:[%s2947_s1 + $0x3c8] ss:$12 sps:$4 sm:$0xff]  }
  0x80   :  { %1536 = vmatpush2.bf16.msra.mxu1 %v2211_v13  ;;  %1929 = vmatprep.subr.bf16.mxu0 %v2218_v14  ;;  %v2279_v13 = vld [vmem:[%s2947_s1 + $0x548] ss:$12 sps:$4 sm:$0xff]  }
  0x81   :  { %1951 = vmatprep.subr.bf16.mxu1 %v2219_v15  ;;  %v2280_v14 = vld [vmem:[%s2947_s1 + $0x308] ss:$12 sps:$4 sm:$0xff]  }
  0x82   :  { %1497 = vmatmul.mubr.bf16.vlgmr.msra.gmra.mxu0 %v2731_v17  ;;  %v2281_v15 = vld [vmem:[%s2947_s1 + $0x488] ss:$12 sps:$4 sm:$0xff]  }
  0x83   :  { %1538 = vmatmul.mubr.bf16.vlgmr.msra.gmra.mxu1 %v2735_v18  ;;  %1930 = vmatpush3.bf16.msra.mxu0 %v2220_v16  ;;  %v2282_v16 = vmov 0.0  }
  0x84   :  { %1952 = vmatpush3.bf16.msra.mxu1 %v2221_v19  ;;  %1931 = vmatprep.subr.bf16.mxu0 %v2222_v20  ;;  %66 = vst.msk [vmem:[%s2949_s2 + $0x10] sm:$0xff] %vm65_vm0, %v2282_v16 }
  0x85   :  { %1953 = vmatprep.subr.bf16.mxu1 %v2223_v21  ;;  %1578 = vmatprep.mubr.bf16.mxu0 %v2439_v47  ;;  %v2232_v47 = vld [vmem:[%s2947_s1 + $0x68] ss:$12 sps:$4 sm:$0xff]  }
  0x86   :  { %1618 = vmatprep.mubr.bf16.mxu1 %v2450_v51  ;;  %v2233_v51 = vld [vmem:[%s2947_s1 + $0x1e8] ss:$12 sps:$4 sm:$0xff]  }
  0x87   :  { %1932 = vmatpush3.bf16.msra.mxu0 %v2224_v22 }
  0x88   :  { %1954 = vmatpush3.bf16.msra.mxu1 %v2225_v23  ;;  %1933 = vmatprep.subr.bf16.mxu0 %v2226_v24 }
  0x89   :  { %1955 = vmatprep.subr.bf16.mxu1 %v2227_v25 }
  0x8b   :  { %1934 = vmatpush3.bf16.msra.mxu0 %v2228_v26 }
  0x8c   :  { %1956 = vmatpush3.bf16.msra.mxu1 %v2229_v27  ;;  %1935 = vmatprep.subr.bf16.mxu0 %v2230_v28 }
  0x8d   :  { %1957 = vmatprep.subr.bf16.mxu1 %v2231_v29 }
  0x8f   :  { %1936 = vmatpush3.bf16.msra.mxu0 %v2232_v47 }
  0x90   :  { %1958 = vmatpush3.bf16.msra.mxu1 %v2233_v51  ;;  %1937 = vmatprep.subr.bf16.mxu0 %v2234_v30 }
  0x91   :  { %1959 = vmatprep.subr.bf16.mxu1 %v2235_v31 }
  0x93   :  { %1938 = vmatpush3.bf16.msra.mxu0 %v2236_v32 }
  0x94   :  { %1960 = vmatpush3.bf16.msra.mxu1 %v2237_v33  ;;  %1939 = vmatprep.subr.bf16.mxu0 %v2238_v34 }
  0x95   :  { %1961 = vmatprep.subr.bf16.mxu1 %v2239_v35 }
  0x97   :  { %1940 = vmatpush3.bf16.msra.mxu0 %v2240_v38 }
  0x98   :  { %1962 = vmatpush3.bf16.msra.mxu1 %v2241_v39  ;;  %1941 = vmatprep.subr.bf16.mxu0 %v2242_v40 }
  0x99   :  { %1963 = vmatprep.subr.bf16.mxu1 %v2243_v41 }
  0x9b   :  { %1942 = vmatpush3.bf16.msra.mxu0 %v2244_v42 }
  0x9c   :  { %1964 = vmatpush3.bf16.msra.mxu1 %v2245_v43  ;;  %1943 = vmatprep.subr.bf16.mxu0 %v2246_v44 }
  0x9d   :  { %1965 = vmatprep.subr.bf16.mxu1 %v2247_v45 }
  0x9f   :  { %1944 = vmatpush3.bf16.msra.mxu0 %v2248_v46 }
  0xa0   :  { %1966 = vmatpush3.bf16.msra.mxu1 %v2249_v48  ;;  %1973 = vmatprep.subr.bf16.mxu0 %v2250_v49 }
  0xa1   :  { %1995 = vmatprep.subr.bf16.mxu1 %v2251_v50 }
  0xa2   :  { %1579 = vmatmul.mubr.bf16.vlgmr.msra.gmra.mxu0 %v2508_v6  ;;  %v2259_v6 = vld [vmem:[%s2947_s1 + $0x5c0] ss:$12 sps:$4 sm:$0xff]  }
  0xa3   :  { %1619 = vmatmul.mubr.bf16.vlgmr.msra.gmra.mxu1 %v2510_v7  ;;  %1974 = vmatpush3.bf16.msra.mxu0 %v2252_v52  ;;  %v2260_v7 = vld [vmem:[%s2947_s1 + $0x380] ss:$12 sps:$4 sm:$0xff]  }
  0xa4   :  { %1996 = vmatpush3.bf16.msra.mxu1 %v2253_v53  ;;  %1975 = vmatprep.subr.bf16.mxu0 %v2254_v54 }
  0xa5   :  { %1997 = vmatprep.subr.bf16.mxu1 %v2255_v55  ;;  %1658 = vmatprep.mubr.bf16.mxu0 %v2604_v36  ;;  %v2263_v36 = vld [vmem:[%s2947_s1 + $0x5a8] ss:$12 sps:$4 sm:$0xff]  }
  0xa6   :  { %1698 = vmatprep.mubr.bf16.mxu1 %v2608_v37  ;;  %v2264_v37 = vld [vmem:[%s2947_s1 + $0x368] ss:$12 sps:$4 sm:$0xff]  }
  0xa7   :  { %1976 = vmatpush3.bf16.msra.mxu0 %v2256_v56 }
  0xa8   :  { %1998 = vmatpush3.bf16.msra.mxu1 %v2257_v57  ;;  %1977 = vmatprep.subr.bf16.mxu0 %v2258_v58 }
  0xa9   :  { %1999 = vmatprep.subr.bf16.mxu1 %v2259_v6 }
  0xab   :  { %1978 = vmatpush3.bf16.msra.mxu0 %v2260_v7 }
  0xac   :  { %2000 = vmatpush3.bf16.msra.mxu1 %v2261_v59  ;;  %1979 = vmatprep.subr.bf16.mxu0 %v2262_v60  ;;  %v69_v59 = vld [vmem:[%s2949_s2 + $0x10] sm:$0xff] }
  0xad   :  { %2001 = vmatprep.subr.bf16.mxu1 %v2263_v36 }
  0xaf   :  { %1980 = vmatpush3.bf16.msra.mxu0 %v2264_v37 }
  0xb0   :  { %2002 = vmatpush3.bf16.msra.mxu1 %v2265_v61  ;;  %1981 = vmatprep.subr.bf16.mxu0 %v2266_v62 }
  0xb1   :  { %2003 = vmatprep.subr.bf16.mxu1 %v2267_v63 }
  0xb3   :  { %1982 = vmatpush3.bf16.msra.mxu0 %v2268_v0 }
  0xb4   :  { %2004 = vmatpush3.bf16.msra.mxu1 %v2269_v1  ;;  %1983 = vmatprep.subr.bf16.mxu0 %v2270_v2 }
  0xb5   :  { %2005 = vmatprep.subr.bf16.mxu1 %v2271_v3 }
  0xb7   :  { %1984 = vmatpush3.bf16.msra.mxu0 %v2272_v4 }
  0xb8   :  { %2006 = vmatpush3.bf16.msra.mxu1 %v2273_v5  ;;  %1985 = vmatprep.subr.bf16.mxu0 %v2274_v8 }
  0xb9   :  { %2007 = vmatprep.subr.bf16.mxu1 %v2275_v9 }
  0xbb   :  { %1986 = vmatpush3.bf16.msra.mxu0 %v2276_v10 }
  0xbc   :  { %2008 = vmatpush3.bf16.msra.mxu1 %v2277_v11  ;;  %1987 = vmatprep.subr.bf16.mxu0 %v2278_v12 }
  0xbd   :  { %2009 = vmatprep.subr.bf16.mxu1 %v2279_v13 }
  0xbf   :  { %1988 = vmatpush3.bf16.msra.mxu0 %v2280_v14 }
  0xc0   :  { %2010 = vmatpush3.bf16.msra.mxu1 %v2281_v15 }
  0xc2   :  { %1659 = vmatmul.mubr.bf16.vlgmr.msra.gmra.mxu0 %v2731_v17 }
  0xc3   :  { %1699 = vmatmul.mubr.bf16.vlgmr.msra.gmra.mxu1 %v2735_v18 }
 0x102   :  { %v1416_v19 = vpop.f32.mrf.mxu0 }
 0x103   :  { %v1457_v20 = vpop.f32.mrf.mxu1 }
 0x104   :  { %v1418_v21 = vpop.f32.mrf.mxu0  ;;  %v1458_v27 = vadd.f32 %v1457_v20, %v1416_v19 }
 0x105   :  { %v1459_v22 = vpop.f32.mrf.mxu1 }
 0x106   :  { %v1420_v23 = vpop.f32.mrf.mxu0  ;;  %v1460_v29 = vadd.f32 %v1459_v22, %v1418_v21 }
 0x107   :  { %v1461_v24 = vpop.f32.mrf.mxu1 }
 0x108   :  { %v1421_v25 = vpop.f32.mrf.mxu0 }
 0x109   :  { %v1462_v26 = vpop.f32.mrf.mxu1 }
 0x142   :  { %v1498_v28 = vpop.f32.mrf.mxu0 }
 0x143   :  { %v1539_v17 = vpop.f32.mrf.mxu1  ;;  %v1499_v18 = vadd.f32 %v1498_v28, %v1458_v27 }
 0x144   :  { %v1500_v47 = vpop.f32.mrf.mxu0 }
 0x145   :  { %v1541_v51 = vpop.f32.mrf.mxu1  ;;  %v1540_v30 = vadd.f32 %v1539_v17, %v1499_v18  ;;  %v1501_v31 = vadd.f32 %v1500_v47, %v1460_v29 }
 0x146   :  { %v1502_v32 = vpop.f32.mrf.mxu0 }
 0x147   :  { %v1543_v33 = vpop.f32.mrf.mxu1  ;;  %v1542_v34 = vadd.f32 %v1541_v51, %v1501_v31  ;;  %1709 = vst [vmem:[%s2949_s2] sm:$0xff] %v1540_v30 }
 0x148   :  { %v1503_v35 = vpop.f32.mrf.mxu0 }
 0x149   :  { %v1544_v38 = vpop.f32.mrf.mxu1  ;;  %1710 = vst [vmem:[%s2949_s2 + $0x8] sm:$0xff] %v1542_v34 }
 0x162   :  { %v1945_v39 = vpop.f32.mrf.mxu0 }
 0x163   :  { %v1967_v40 = vpop.f32.mrf.mxu1 }
 0x164   :  { %v1946_v41 = vpop.f32.mrf.mxu0 }
 0x165   :  { %v1968_v42 = vpop.f32.mrf.mxu1  ;;  %v1947_v48 = vadd.f32 %v1946_v41, %v1945_v39 }
 0x166   :  { %v1948_v43 = vpop.f32.mrf.mxu0  ;;  %v1969_v49 = vadd.f32 %v1968_v42, %v1967_v40 }
 0x167   :  { %v1970_v44 = vpop.f32.mrf.mxu1 }
 0x168   :  { %v1949_v45 = vpop.f32.mrf.mxu0  ;;  %v1621_v55 = vadd.f32 %v1969_v49, %v1947_v48 }
 0x169   :  { %v1971_v46 = vpop.f32.mrf.mxu1 }
 0x182   :  { %v1989_v50 = vpop.f32.mrf.mxu0 }
 0x183   :  { %v2011_v52 = vpop.f32.mrf.mxu1 }
 0x184   :  { %v1990_v53 = vpop.f32.mrf.mxu0 }
 0x185   :  { %v2012_v54 = vpop.f32.mrf.mxu1  ;;  %v1991_v56 = vadd.f32 %v1990_v53, %v1989_v50 }
 0x186   :  { %v1992_v57 = vpop.f32.mrf.mxu0  ;;  %v2013_v7 = vadd.f32 %v2012_v54, %v2011_v52 }
 0x187   :  { %v2014_v58 = vpop.f32.mrf.mxu1  ;;  %v1661_v6 = vadd.f32 %v1991_v56, %v1621_v55 }
 0x188   :  { %v1993_v60 = vpop.f32.mrf.mxu0 }
 0x189   :  { %v2015_v36 = vpop.f32.mrf.mxu1  ;;  %v1701_v37 = vadd.f32 %v2013_v7, %v1661_v6 }
 0x18b   :  { %v1708_v61 = vadd.f32 %v1701_v37, %v69_v59 }
 0x18d   :  { %1712 = vst.msk [vmem:[%s2949_s2 + $0x10] sm:$0xff] %vm65_vm0, %v1708_v61 }

</bundles_post_ra>
